<compile_context>
chip_gen: v7x
topology: tpu7x:2x2x1
jax: 0.10.0
libtpu: 0.0.40
codegen_flags: <defaults>
</compile_context>

<pallas_src>
import math

import jax
import jax.numpy as jnp
from jax import lax
from jax.experimental import pallas as pl
from jax.experimental.pallas import tpu as pltpu

_LN_EPS = 1e-5    # torch nn.LayerNorm default
_EMA_EPS = 1e-5   # EMANormalizer eps


def _layer_norm_relu(h, gamma, beta, c):
    # Single-pass LN stats: sum + sum-of-squares, f32 accumulation,
    # var = E[h^2] - m^2 with a clamp against tiny negative cancellation.
    inv_c = 1.0 / float(c)
    s1 = jnp.sum(h, axis=-1, keepdims=True)
    s2 = jnp.sum(h * h, axis=-1, keepdims=True)
    m = s1 * inv_c
    v = jnp.maximum(s2 * inv_c - m * m, 0.0)
    h = (h - m) * lax.rsqrt(v + _LN_EPS) * gamma + beta
    return jnp.maximum(h, 0.0)


def _tdm_actor_kernel(x_ref, w1_ref, vec_ref, w2_ref, o_ref):
    # x_ref:   (TB, F_pad) bf16 -- opponent masking + EMA normalization were
    #          folded into the input / layer-1 weights in the wrapper.
    # w1_ref:  (F_pad, C) bf16; w2_ref: (C, C) bf16 (VMEM-resident across tiles).
    # vec_ref: (8, C) f32 = [b1, g1, be1, b2, g2, be2, 0, 0].
    c = o_ref.shape[-1]
    b1, g1, be1 = vec_ref[0:1, :], vec_ref[1:2, :], vec_ref[2:3, :]
    b2, g2, be2 = vec_ref[3:4, :], vec_ref[4:5, :], vec_ref[5:6, :]

    # Layer 1: Linear (MXU, bf16 in / f32 acc) -> LayerNorm -> ReLU
    h = jnp.dot(x_ref[...], w1_ref[...],
                preferred_element_type=jnp.float32) + b1
    h = _layer_norm_relu(h, g1, be1, c)

    # Layer 2: Linear -> LayerNorm -> ReLU
    h2 = jnp.dot(h.astype(w2_ref.dtype), w2_ref[...],
                 preferred_element_type=jnp.float32) + b2
    h2 = _layer_norm_relu(h2, g2, be2, c)

    # bf16 output halves the HBM write stream.  C=32 < 128 lanes -> masked
    # stores; accepted since the write stream is small vs. the bf16 x reads.
    o_ref[...] = h2.astype(o_ref.dtype)


def init_params(key, num_obs_features, num_channels):
    """Deterministic parameter init mirroring nn.Linear / nn.LayerNorm /
    EMANormalizer defaults."""
    k1, k2, k3, k4 = jax.random.split(key, 4)
    bound1 = 1.0 / math.sqrt(num_obs_features)
    bound2 = 1.0 / math.sqrt(num_channels)
    # torch Linear stores (out, in); keep that convention, transpose in glue.
    w1 = jax.random.uniform(k1, (num_channels, num_obs_features),
                            jnp.float32, -bound1, bound1)
    b1 = jax.random.uniform(k2, (num_channels,), jnp.float32, -bound1, bound1)
    w2 = jax.random.uniform(k3, (num_channels, num_channels),
                            jnp.float32, -bound2, bound2)
    b2 = jax.random.uniform(k4, (num_channels,), jnp.float32, -bound2, bound2)
    return {
        "w1": w1, "b1": b1,
        "g1": jnp.ones((num_channels,), jnp.float32),
        "be1": jnp.zeros((num_channels,), jnp.float32),
        "w2": w2, "b2": b2,
        "g2": jnp.ones((num_channels,), jnp.float32),
        "be2": jnp.zeros((num_channels,), jnp.float32),
        # EMANormalizer buffers (untrained)
        "mu": jnp.zeros((num_obs_features,), jnp.float32),
        "var": jnp.ones((num_obs_features,), jnp.float32),
    }


def _round_up(x, m):
    return (x + m - 1) // m * m


def _cdiv(a, b):
    return (a + b - 1) // b


def tdm_actor_net(obs_tensors, params, *, tile_b=8192, min_grid_steps=8):
    (self_obs, teammate_obs, opponent_obs, lidar,
     hp, magazine, alive, opponent_masks) = obs_tensors
    B = self_obs.shape[0]
    C = params["w1"].shape[0]

    # ---- wrapper preprocessing: one fused bf16 pass over the x stream ------
    # Opponent masking on the small (B, n_opp, d) tensor before flatten/concat
    # (exactly as the torch module) -> no (B, F) mask ever hits HBM.
    opponent_obs_masked = opponent_obs * opponent_masks

    def piece(t):
        return t.reshape(B, -1).astype(jnp.bfloat16)

    flattened = jnp.concatenate([
        piece(self_obs), piece(teammate_obs), piece(opponent_obs_masked),
        piece(lidar), piece(hp), piece(magazine), piece(alive)], axis=1)
    F = flattened.shape[1]

    # Fold EMANormalizer into layer-1 weights (f32 math, cast to bf16 once):
    #   ((x - mu) * inv) @ W1.T + b1 == x @ (inv[:,None] * W1.T) + (b1 - (mu*inv) @ W1.T)
    inv = lax.rsqrt(params["var"] + _EMA_EPS)              # (F,)
    w1t = params["w1"].T                                   # (F, C)
    w1f = w1t * inv[:, None]
    b1f = params["b1"] - (params["mu"] * inv) @ w1t

    # Batch tile: as large as possible (cap `tile_b`) while keeping at least
    # `min_grid_steps` grid steps so v7x's two TensorCores both get work and
    # the DMA/compute pipeline stays filled.  TB multiple of 16 (bf16 sublanes).
    TB = min(tile_b, _round_up(max(_cdiv(B, min_grid_steps), 1), 16))
    TB = max(16, _round_up(TB, 16))
    B_pad = _round_up(B, TB)

    # Feature axis 110 -> 128 so the x block / matmul K axis are lane-aligned;
    # padded x cols are zero and the matching w1 rows are zero -> matmul unchanged.
    F_pad = _round_up(F, 128)

    # Single pad (batch + feature) applied to the bf16 slab.
    if B_pad != B or F_pad != F:
        flattened = jnp.pad(flattened, ((0, B_pad - B), (0, F_pad - F)))
    if F_pad != F:
        w1f = jnp.pad(w1f, ((0, F_pad - F), (0, 0)))

    w1_bf16 = w1f.astype(jnp.bfloat16)                     # (F_pad, C)
    w2_bf16 = params["w2"].T.astype(jnp.bfloat16)          # (C, C)

    # Pack the six (1, C) bias/scale vectors into one resident (8, C) slab.
    zeros_c = jnp.zeros((C,), jnp.float32)
    vec_slab = jnp.stack([
        b1f, params["g1"], params["be1"],
        params["b2"], params["g2"], params["be2"],
        zeros_c, zeros_c], axis=0).astype(jnp.float32)     # (8, C)

    def fixed(shape):
        # Constant block index -> weights/biases stay resident across tiles.
        return pl.BlockSpec(shape, lambda i: (0, 0))

    out = pl.pallas_call(
        _tdm_actor_kernel,
        out_shape=jax.ShapeDtypeStruct((B_pad, C), jnp.bfloat16),
        grid_spec=pl.GridSpec(
            grid=(B_pad // TB,),
            in_specs=[
                pl.BlockSpec((TB, F_pad), lambda i: (i, 0)),   # x, batch-tiled
                fixed((F_pad, C)),
                fixed((8, C)),
                fixed((C, C)),
            ],
            out_specs=pl.BlockSpec((TB, C), lambda i: (i, 0)),
        ),
        compiler_params=pltpu.CompilerParams(
            dimension_semantics=("parallel",),        # both TCs on v7x
            vmem_limit_bytes=32 * 1024 * 1024,        # same tile budget on all gens
        ),
    )(flattened, w1_bf16, vec_slab, w2_bf16)

    # bf16 activations; padded rows (variance=0 -> rsqrt(eps), still finite)
    # are sliced off here.  Cast in the caller if f32 is required downstream.
    return out[:B]


if __name__ == "__main__":
    key = jax.random.PRNGKey(0)
    keys = jax.random.split(key, 9)

    B = 2
    # (self, teammate, opponent, lidar, hp, magazine, alive, opponent_masks)
    self_obs = jax.random.normal(keys[0], (B, 2, 10), jnp.float32)
    teammate_obs = jax.random.normal(keys[1], (B, 3, 10), jnp.float32)
    opponent_obs = jax.random.normal(keys[2], (B, 4, 10), jnp.float32)
    lidar = jax.random.normal(keys[3], (B, 16), jnp.float32)
    hp = jax.random.normal(keys[4], (B, 1), jnp.float32)
    magazine = jax.random.normal(keys[5], (B, 2), jnp.float32)
    alive = jax.random.normal(keys[6], (B, 1), jnp.float32)
    opponent_masks = (jax.random.uniform(keys[7], (B, 4, 1)) > 0.5).astype(jnp.float32)

    num_obs_features = (2 * 10) + (3 * 10) + (4 * 10) + 16 + 1 + 2 + 1  # 110
    num_channels = 32

    params = init_params(keys[8], num_obs_features, num_channels)

    obs_tensors = (self_obs, teammate_obs, opponent_obs, lidar,
                   hp, magazine, alive, opponent_masks)

    out = tdm_actor_net(obs_tensors, params)
    jax.block_until_ready(out)
    assert out.shape == (B, num_channels) and out.dtype == jnp.bfloat16
    assert bool(jnp.all(jnp.isfinite(out.astype(jnp.float32))))
    print("KERNEL_OK")
</pallas_src>

<mosaic_0001>
module attributes {stable_mosaic.version = 11 : i64} {
  func.func @_tdm_actor_kernel(%arg0: i32, %arg1: memref<16x128xbf16, #tpu.memory_space<vmem>>, %arg2: memref<128x32xbf16, #tpu.memory_space<vmem>>, %arg3: memref<8x32xf32, #tpu.memory_space<vmem>>, %arg4: memref<32x32xbf16, #tpu.memory_space<vmem>>, %arg5: memref<16x32xbf16, #tpu.memory_space<vmem>>) attributes {dimension_semantics = [#tpu.dimension_semantics<parallel>], iteration_bounds = array<i64: 1>, scalar_prefetch = 0 : i64, scratch_operands = 0 : i64, tpu.core_type = #tpu.core_type<tc>, window_params = [{transform_indices = @transform_0, window_bounds = array<i64: 16, 128>}, {pipeline_mode = #tpu.pipeline_mode<synchronous>, transform_indices = @transform_1, window_bounds = array<i64: 128, 32>}, {pipeline_mode = #tpu.pipeline_mode<synchronous>, transform_indices = @transform_2, window_bounds = array<i64: 8, 32>}, {pipeline_mode = #tpu.pipeline_mode<synchronous>, transform_indices = @transform_3, window_bounds = array<i64: 32, 32>}, {transform_indices = @transform_4, window_bounds = array<i64: 16, 32>}]} {
    %c0 = arith.constant 0 : index
    %c0_0 = arith.constant 0 : index
    %0 = vector.load %arg3[%c0, %c0_0] : memref<8x32xf32, #tpu.memory_space<vmem>>, vector<1x32xf32>
    %c1 = arith.constant 1 : index
    %c0_1 = arith.constant 0 : index
    %1 = vector.load %arg3[%c1, %c0_1] : memref<8x32xf32, #tpu.memory_space<vmem>>, vector<1x32xf32>
    %c2 = arith.constant 2 : index
    %c0_2 = arith.constant 0 : index
    %2 = vector.load %arg3[%c2, %c0_2] : memref<8x32xf32, #tpu.memory_space<vmem>>, vector<1x32xf32>
    %c3 = arith.constant 3 : index
    %c0_3 = arith.constant 0 : index
    %3 = vector.load %arg3[%c3, %c0_3] : memref<8x32xf32, #tpu.memory_space<vmem>>, vector<1x32xf32>
    %c4 = arith.constant 4 : index
    %c0_4 = arith.constant 0 : index
    %4 = vector.load %arg3[%c4, %c0_4] : memref<8x32xf32, #tpu.memory_space<vmem>>, vector<1x32xf32>
    %c5 = arith.constant 5 : index
    %c0_5 = arith.constant 0 : index
    %5 = vector.load %arg3[%c5, %c0_5] : memref<8x32xf32, #tpu.memory_space<vmem>>, vector<1x32xf32>
    %c0_6 = arith.constant 0 : index
    %c0_7 = arith.constant 0 : index
    %6 = vector.load %arg1[%c0_6, %c0_7] : memref<16x128xbf16, #tpu.memory_space<vmem>>, vector<16x128xbf16>
    %c0_8 = arith.constant 0 : index
    %c0_9 = arith.constant 0 : index
    %7 = vector.load %arg2[%c0_8, %c0_9] : memref<128x32xbf16, #tpu.memory_space<vmem>>, vector<128x32xbf16>
    %cst = arith.constant dense<0.000000e+00> : vector<16x32xf32>
    %8 = tpu.matmul %6, %7, %cst {dimension_numbers = #tpu.dot_dimension_numbers<[1], [0], [0], [1], [0, 0, 1, 1], [], []>} : vector<16x128xbf16>, vector<128x32xbf16>, vector<16x32xf32> -> vector<16x32xf32>
    %9 = vector.broadcast %0 : vector<1x32xf32> to vector<16x32xf32>
    %10 = arith.addf %8, %9 : vector<16x32xf32>
    %cst_10 = arith.constant dense<0.000000e+00> : vector<16xf32>
    %11 = vector.multi_reduction <add>, %10, %cst_10 [1] : vector<16x32xf32> to vector<16xf32>
    %12 = vector.shape_cast %11 : vector<16xf32> to vector<16x1xf32>
    %13 = arith.mulf %10, %10 : vector<16x32xf32>
    %cst_11 = arith.constant dense<0.000000e+00> : vector<16xf32>
    %14 = vector.multi_reduction <add>, %13, %cst_11 [1] : vector<16x32xf32> to vector<16xf32>
    %15 = vector.shape_cast %14 : vector<16xf32> to vector<16x1xf32>
    %cst_12 = arith.constant 3.125000e-02 : f32
    %16 = vector.broadcast %cst_12 : f32 to vector<16x1xf32>
    %17 = arith.mulf %12, %16 : vector<16x1xf32>
    %cst_13 = arith.constant 3.125000e-02 : f32
    %18 = vector.broadcast %cst_13 : f32 to vector<16x1xf32>
    %19 = arith.mulf %15, %18 : vector<16x1xf32>
    %20 = arith.mulf %17, %17 : vector<16x1xf32>
    %21 = arith.subf %19, %20 : vector<16x1xf32>
    %cst_14 = arith.constant 0.000000e+00 : f32
    %22 = vector.broadcast %cst_14 : f32 to vector<16x1xf32>
    %23 = arith.maximumf %21, %22 : vector<16x1xf32>
    %24 = vector.broadcast %17 : vector<16x1xf32> to vector<16x32xf32>
    %25 = arith.subf %10, %24 : vector<16x32xf32>
    %cst_15 = arith.constant 9.99999974E-6 : f32
    %26 = vector.broadcast %cst_15 : f32 to vector<16x1xf32>
    %27 = arith.addf %23, %26 : vector<16x1xf32>
    %28 = math.rsqrt %27 : vector<16x1xf32>
    %29 = vector.broadcast %28 : vector<16x1xf32> to vector<16x32xf32>
    %30 = arith.mulf %25, %29 : vector<16x32xf32>
    %31 = vector.broadcast %1 : vector<1x32xf32> to vector<16x32xf32>
    %32 = arith.mulf %30, %31 : vector<16x32xf32>
    %33 = vector.broadcast %2 : vector<1x32xf32> to vector<16x32xf32>
    %34 = arith.addf %32, %33 : vector<16x32xf32>
    %cst_16 = arith.constant 0.000000e+00 : f32
    %35 = vector.broadcast %cst_16 : f32 to vector<16x32xf32>
    %36 = arith.maximumf %34, %35 : vector<16x32xf32>
    %37 = arith.truncf %36 : vector<16x32xf32> to vector<16x32xbf16>
    %c0_17 = arith.constant 0 : index
    %c0_18 = arith.constant 0 : index
    %38 = vector.load %arg4[%c0_17, %c0_18] : memref<32x32xbf16, #tpu.memory_space<vmem>>, vector<32x32xbf16>
    %cst_19 = arith.constant dense<0.000000e+00> : vector<16x32xf32>
    %39 = tpu.matmul %37, %38, %cst_19 {dimension_numbers = #tpu.dot_dimension_numbers<[1], [0], [0], [1], [0, 0, 1, 1], [], []>} : vector<16x32xbf16>, vector<32x32xbf16>, vector<16x32xf32> -> vector<16x32xf32>
    %40 = vector.broadcast %3 : vector<1x32xf32> to vector<16x32xf32>
    %41 = arith.addf %39, %40 : vector<16x32xf32>
    %cst_20 = arith.constant dense<0.000000e+00> : vector<16xf32>
    %42 = vector.multi_reduction <add>, %41, %cst_20 [1] : vector<16x32xf32> to vector<16xf32>
    %43 = vector.shape_cast %42 : vector<16xf32> to vector<16x1xf32>
    %44 = arith.mulf %41, %41 : vector<16x32xf32>
    %cst_21 = arith.constant dense<0.000000e+00> : vector<16xf32>
    %45 = vector.multi_reduction <add>, %44, %cst_21 [1] : vector<16x32xf32> to vector<16xf32>
    %46 = vector.shape_cast %45 : vector<16xf32> to vector<16x1xf32>
    %cst_22 = arith.constant 3.125000e-02 : f32
    %47 = vector.broadcast %cst_22 : f32 to vector<16x1xf32>
    %48 = arith.mulf %43, %47 : vector<16x1xf32>
    %cst_23 = arith.constant 3.125000e-02 : f32
    %49 = vector.broadcast %cst_23 : f32 to vector<16x1xf32>
    %50 = arith.mulf %46, %49 : vector<16x1xf32>
    %51 = arith.mulf %48, %48 : vector<16x1xf32>
    %52 = arith.subf %50, %51 : vector<16x1xf32>
    %cst_24 = arith.constant 0.000000e+00 : f32
    %53 = vector.broadcast %cst_24 : f32 to vector<16x1xf32>
    %54 = arith.maximumf %52, %53 : vector<16x1xf32>
    %55 = vector.broadcast %48 : vector<16x1xf32> to vector<16x32xf32>
    %56 = arith.subf %41, %55 : vector<16x32xf32>
    %cst_25 = arith.constant 9.99999974E-6 : f32
    %57 = vector.broadcast %cst_25 : f32 to vector<16x1xf32>
    %58 = arith.addf %54, %57 : vector<16x1xf32>
    %59 = math.rsqrt %58 : vector<16x1xf32>
    %60 = vector.broadcast %59 : vector<16x1xf32> to vector<16x32xf32>
    %61 = arith.mulf %56, %60 : vector<16x32xf32>
    %62 = vector.broadcast %4 : vector<1x32xf32> to vector<16x32xf32>
    %63 = arith.mulf %61, %62 : vector<16x32xf32>
    %64 = vector.broadcast %5 : vector<1x32xf32> to vector<16x32xf32>
    %65 = arith.addf %63, %64 : vector<16x32xf32>
    %cst_26 = arith.constant 0.000000e+00 : f32
    %66 = vector.broadcast %cst_26 : f32 to vector<16x32xf32>
    %67 = arith.maximumf %65, %66 : vector<16x32xf32>
    %68 = arith.truncf %67 : vector<16x32xf32> to vector<16x32xbf16>
    %c0_27 = arith.constant 0 : index
    %c0_28 = arith.constant 0 : index
    %69 = vector.load %arg5[%c0_27, %c0_28] : memref<16x32xbf16, #tpu.memory_space<vmem>>, vector<16x32xbf16>
    tpu.vector_store %arg5[%c0_27, %c0_28], %68 {strides = array<i32>} : memref<16x32xbf16, #tpu.memory_space<vmem>>, vector<16x32xbf16>,
    return
  }
  func.func @transform_0(%arg0: i32) -> (i32, i32) {
    %c0_i32 = arith.constant 0 : i32
    %c0_i32_0 = arith.constant 0 : i32
    return %arg0, %c0_i32 : i32, i32
  }
  func.func @transform_1(%arg0: i32) -> (i32, i32) {
    %c0_i32 = arith.constant 0 : i32
    %c0_i32_0 = arith.constant 0 : i32
    %c0_i32_1 = arith.constant 0 : i32
    return %c0_i32, %c0_i32_0 : i32, i32
  }
  func.func @transform_2(%arg0: i32) -> (i32, i32) {
    %c0_i32 = arith.constant 0 : i32
    %c0_i32_0 = arith.constant 0 : i32
    %c0_i32_1 = arith.constant 0 : i32
    return %c0_i32, %c0_i32_0 : i32, i32
  }
  func.func @transform_3(%arg0: i32) -> (i32, i32) {
    %c0_i32 = arith.constant 0 : i32
    %c0_i32_0 = arith.constant 0 : i32
    %c0_i32_1 = arith.constant 0 : i32
    return %c0_i32, %c0_i32_0 : i32, i32
  }
  func.func @transform_4(%arg0: i32) -> (i32, i32) {
    %c0_i32 = arith.constant 0 : i32
    %c0_i32_0 = arith.constant 0 : i32
    return %arg0, %c0_i32 : i32, i32
  }
}

</mosaic_0001>

<bundles_post_ra>
// kernel: tpu_custom_call.1
= control target key start
LH: loop header
LB: loop body
LE: loop exit
PB: predicated region body
PF: predicated region fallthrough
CT: control target
= control target key end

     0   :  { %v437_v1 = vmov 0.0   ;;  %vm438_vm0 = vmmov 0   ;;  %s539_s0 = inlined_call_operand.vmem [shape: bf16[16,128], index: 0, kind: input, shape index: {}]   ;;  %s540_s1 = inlined_call_operand.vmem [shape: bf16[128,32], index: 1, kind: input, shape index: {}]   ;;  %s541_s2 = inlined_call_operand.vmem [shape: f32[8,32], index: 2, kind: input, shape index: {}]   ;;  %s542_s3 = inlined_call_operand.vmem [shape: bf16[32,32], index: 3, kind: input, shape index: {}]   ;;  %s543_s4 = inlined_call_operand.hbm [shape: bf16[16,32], index: 4, kind: output, shape index: {}]  }
   0x1   :  { %v394_v0 = vld [vmem:[%s540_s1] sm:$0xff]   ;;  %361 = vmatprep.subr.bf16.mxu0 %v437_v1  ;;  %381 = vmatprep.subr.bf16.mxu1 %v437_v1  ;;  %v395_v2 = vld [vmem:[%s540_s1 + $0x8] sm:$0xff]   ;;  %v396_v3 = vld [vmem:[%s540_s1 + $0x10] sm:$0xff]  }
   0x2   :  { %362 = vmatpush3.bf16.msra.mxu0 %v394_v0  ;;  %377 = vmatprep.mubr.msk.bf16.mxu0 %vm438_vm0, %v437_v1  ;;  %v397_v4 = vld [vmem:[%s540_s1 + $0x18] sm:$0xff]  }
   0x3   :  { %363 = vmatprep.subr.bf16.mxu0 %v437_v1  ;;  %385 = vmatprep.mubr.msk.bf16.mxu1 %vm438_vm0, %v437_v1 }
   0x6   :  { %364 = vmatpush3.bf16.msra.mxu0 %v395_v2 }
   0x7   :  { %365 = vmatprep.subr.bf16.mxu0 %v437_v1 }
   0xa   :  { %366 = vmatpush3.bf16.msra.mxu0 %v396_v3 }
   0xb   :  { %9 = vsyncpa [#allocation3], 0  ;;  %367 = vmatprep.subr.bf16.mxu0 %v437_v1  ;;  %v398_v5 = vld [vmem:[%s540_s1 + $0x20] sm:$0xff]   ;;  %v399_v6 = vld [vmem:[%s540_s1 + $0x28] sm:$0xff]   ;;  %vm142_vm1 = vcmask 261120   ;;  %s439_s20 = smov [#allocation2]  }
   0xc   :  { %v400_v7 = vld [vmem:[%s540_s1 + $0x30] sm:$0xff]   ;;  %v401_v8 = vld [vmem:[%s540_s1 + $0x38] sm:$0xff]   ;;  %v402_v9 = vld [vmem:[%s539_s0] sm:$0xff]   ;;  %s316_s21 = sshll.u32 %s439_s20, 4  ;;  %vm308_vm2 = vcmask 257024   ;;  %s317_s21 = int_to_ptr.vmem [resolvable:$true] %s316_s21 }
   0xd   :  { %v327_v10 = vld [vmem:[%s541_s2] ss:$0 sm:$0xff]  ;;  %v404_v24 = vld [vmem:[%s542_s3 + $0x8] sm:$0xff]   ;;  %v337_v43 = vld [vmem:[%s541_s2 + $0x1] ss:$0 sm:$0xff]  ;;  %s413_s22 = scalar_lea.vmem %s317_s21, 128  ;;  %p418_p1 = scmp.lt.s32.totalorder %s317_s21, %s317_s21 }
   0xe   :  { %368 = vmatpush3.bf16.msra.mxu0 %v397_v4  ;;  %v403_v23 = vld [vmem:[%s542_s3] sm:$0xff]   ;;  %p414_p0 = scmp.ne.s32.totalorder %s317_s21, %s413_s22  ;;  %p419_p2 = scmp.lt.s32.totalorder %s413_s22, %s413_s22 }
   0xf   :  { %369 = vmatprep.subr.bf16.mxu0 %v437_v1  ;;  %382 = vmatpush3.bf16.msra.mxu1 %v403_v23  ;;  %v338_v48 = vld [vmem:[%s541_s2 + $0x2] ss:$0 sm:$0xff]  ;;  %v339_v56 = vld [vmem:[%s541_s2 + $0x3] ss:$0 sm:$0xff]  ;;  %v343_v23 = vld [vmem:[%s541_s2 + $0x4] ss:$0 sm:$0xff] }
  0x10   :  { %383 = vmatprep.subr.bf16.mxu1 %v437_v1  ;;  %p420_p3 = por %p419_p2, %p418_p1 }
  0x12   :  { %370 = vmatpush3.bf16.msra.mxu0 %v398_v5  ;;  %p421_p4 = pnand %p420_p3, %p414_p0 }
  0x13   :  { %371 = vmatprep.subr.bf16.mxu0 %v437_v1  ;;  %384 = vmatpush3.bf16.msra.mxu1 %v404_v24 }
  0x16   :  { %372 = vmatpush3.bf16.msra.mxu0 %v399_v6 }
  0x17   :  { %373 = vmatprep.subr.bf16.mxu0 %v437_v1 }
  0x1a   :  { %374 = vmatpush3.bf16.msra.mxu0 %v400_v7 }
  0x1b   :  { %375 = vmatprep.subr.bf16.mxu0 %v437_v1 }
  0x1e   :  { %376 = vmatpush3.bf16.msra.mxu0 %v401_v8 }
  0x21   :  { %378 = vmatmul.mubr.bf16.vlgmr.msra.gmra.mrb[0].mxu0 %v402_v9 }
  0xf4   :  { %v135_v11 = vpop.f32.mrb[0].mxu0 }
  0xf5   :  { %v136_v12 = vadd.f32 %v327_v10, %v135_v11  ;;  %v379_v13 = vpop.f32.mrb[1].mxu0 }
  0xf6   :  { %v138_v14 = vpop.f32.mrb[2].mxu0 }
  0xf7   :  { %v139_v15 = vadd.f32 %v327_v10, %v138_v14  ;;  %v380_v16 = vpop.f32.mrb[3].mxu0  ;;  %v143_v17 = vsel %vm142_vm1, %v136_v12, 0.0  ;;  %v149_v18 = vmul.f32 %v136_v12, %v136_v12 }
  0xf8   :  { %144 = vadd.xlane.f32.xlu0 %v143_v17 }
  0xf9   :  { %v151_v19 = vsel %vm142_vm1, %v149_v18, 0.0  ;;  %v150_v20 = vmul.f32 %v139_v15, %v139_v15  ;;  %v146_v21 = vsel %vm142_vm1, %v139_v15, 0.0 }
  0xfa   :  { %152 = vadd.xlane.f32.xlu1 %v151_v19 }
  0xfb   :  { %v154_v22 = vsel %vm142_vm1, %v150_v20, 0.0 }
  0xfc   :  { %147 = vadd.xlane.f32.xlu0 %v146_v21 }
  0xfe   :  { %155 = vadd.xlane.f32.xlu1 %v154_v22 }
 0x185   :  { %v145_v25 = vpop.xlane.xlu0 %144 }
 0x186   :  { %v157_v26 = vmul.f32 0.03125, %v145_v25 }
 0x187   :  { %v153_v27 = vpop.xlane.xlu1 %152 }
 0x188   :  { %v161_v28 = vmul.f32 %v157_v26, %v157_v26  ;;  %v159_v29 = vmul.f32 0.03125, %v153_v27  ;;  %v167_v41 = vsub.f32 %v136_v12, %v157_v26  ;;  %v344_v27 = vld [vmem:[%s541_s2 + $0x5] ss:$0 sm:$0xff] }
 0x189   :  { %v148_v30 = vpop.xlane.xlu0 %147 }
 0x18a   :  { %v163_v31 = vsub.f32 %v159_v29, %v161_v28  ;;  %v158_v32 = vmul.f32 0.03125, %v148_v30 }
 0x18b   :  { %v156_v33 = vpop.xlane.xlu1 %155 }
 0x18c   :  { %v165_v34 = vmax.f32 %v163_v31, 0.0  ;;  %v162_v35 = vmul.f32 %v158_v32, %v158_v32  ;;  %v160_v36 = vmul.f32 0.03125, %v156_v33  ;;  %v168_v45 = vsub.f32 %v139_v15, %v158_v32 }
 0x18e   :  { %v169_v37 = vadd.f32 1e-05, %v165_v34  ;;  %v164_v38 = vsub.f32 %v160_v36, %v162_v35 }
 0x190   :  { %405 = vrsqrt.f32 %v169_v37  ;;  %v166_v39 = vmax.f32 %v164_v38, 0.0 }
 0x192   :  { %v170_v40 = vadd.f32 1e-05, %v166_v39 }
 0x194   :  { %407 = vrsqrt.f32 %v170_v40 }
 0x19a   :  { %v406_v42 = vpop.eup %405 }
 0x19b   :  { %v173_v44 = vmul.f32 %v406_v42, %v167_v41 }
 0x19d   :  { %v179_v46 = vmul.f32 %v337_v43, %v173_v44 }
 0x19e   :  { %v408_v47 = vpop.eup %407 }
 0x19f   :  { %v174_v49 = vmul.f32 %v408_v47, %v168_v45  ;;  %v185_v51 = vadd.f32 %v338_v48, %v179_v46 }
 0x1a1   :  { %v180_v50 = vmul.f32 %v337_v43, %v174_v49  ;;  %v187_v53 = vmax.f32 %v185_v51, 0.0 }
 0x1a3   :  { %v186_v52 = vadd.f32 %v338_v48, %v180_v50 }
 0x1a5   :  { %v188_v54 = vmax.f32 %v186_v52, 0.0 }
 0x1a7   :  { %v189_v55 = vpack.c.bf16 %v188_v54, %v187_v53 }
 0x1a9   :  { %386 = vmatmul.mubr.msk.bf16.vlgmr.msra.gmra.mrb[0].mxu1 %vm142_vm1, %v189_v55 }
 0x27c   :  { %v247_v57 = vpop.f32.mrb[0].mxu1 }
 0x27d   :  { %v248_v58 = vadd.f32 %v339_v56, %v247_v57  ;;  %v387_v59 = vpop.f32.mrb[1].mxu1 }
 0x27e   :  { %v250_v60 = vpop.f32.mrb[2].mxu1 }
 0x27f   :  { %v251_v61 = vadd.f32 %v339_v56, %v250_v60  ;;  %v388_v62 = vpop.f32.mrb[3].mxu1  ;;  %v254_v63 = vsel %vm142_vm1, %v248_v58, 0.0  ;;  %v260_v0 = vmul.f32 %v248_v58, %v248_v58 }
 0x280   :  { %255 = vadd.xlane.f32.xlu0 %v254_v63 }
 0x281   :  { %v257_v1 = vsel %vm142_vm1, %v251_v61, 0.0  ;;  %v261_v2 = vmul.f32 %v251_v61, %v251_v61  ;;  %v262_v3 = vsel %vm142_vm1, %v260_v0, 0.0 }
 0x282   :  { %258 = vadd.xlane.f32.xlu1 %v257_v1 }
 0x283   :  { %v265_v4 = vsel %vm142_vm1, %v261_v2, 0.0 }
 0x284   :  { %263 = vadd.xlane.f32.xlu0 %v262_v3 }
 0x286   :  { %266 = vadd.xlane.f32.xlu1 %v265_v4 }
 0x30d   :  { %v256_v5 = vpop.xlane.xlu0 %255 }
 0x30e   :  { %v268_v6 = vmul.f32 0.03125, %v256_v5 }
 0x30f   :  { %v259_v7 = vpop.xlane.xlu1 %258 }
 0x310   :  { %v269_v8 = vmul.f32 0.03125, %v259_v7  ;;  %v272_v10 = vmul.f32 %v268_v6, %v268_v6  ;;  %v278_v21 = vsub.f32 %v248_v58, %v268_v6 }
 0x311   :  { %v264_v9 = vpop.xlane.xlu0 %263 }
 0x312   :  { %v270_v11 = vmul.f32 0.03125, %v264_v9  ;;  %v273_v13 = vmul.f32 %v269_v8, %v269_v8  ;;  %v279_v24 = vsub.f32 %v251_v61, %v269_v8 }
 0x313   :  { %v267_v12 = vpop.xlane.xlu1 %266 }
 0x314   :  { %v274_v14 = vsub.f32 %v270_v11, %v272_v10  ;;  %v271_v15 = vmul.f32 0.03125, %v267_v12 }
 0x316   :  { %v276_v16 = vmax.f32 %v274_v14, 0.0  ;;  %v275_v17 = vsub.f32 %v271_v15, %v273_v13 }
 0x318   :  { %v280_v18 = vadd.f32 1e-05, %v276_v16  ;;  %v277_v19 = vmax.f32 %v275_v17, 0.0 }
 0x31a   :  { %409 = vrsqrt.f32 %v280_v18  ;;  %v281_v20 = vadd.f32 1e-05, %v277_v19 }
 0x31c   :  { %411 = vrsqrt.f32 %v281_v20 }
 0x324   :  { %v410_v22 = vpop.eup %409 }
 0x325   :  { %v284_v25 = vmul.f32 %v410_v22, %v278_v21 }
 0x326   :  { %v412_v26 = vpop.eup %411 }
 0x327   :  { %v285_v28 = vmul.f32 %v412_v26, %v279_v24  ;;  %v290_v29 = vmul.f32 %v343_v23, %v284_v25 }
 0x329   :  { %v291_v30 = vmul.f32 %v343_v23, %v285_v28  ;;  %v296_v31 = vadd.f32 %v344_v27, %v290_v29 }
 0x32b   :  { %v297_v32 = vadd.f32 %v344_v27, %v291_v30  ;;  %v298_v33 = vmax.f32 %v296_v31, 0.0 }
 0x32d   :  { %v299_v34 = vmax.f32 %v297_v32, 0.0  ;;  %v347_v35 = vpack.c.bf16 %v298_v33, %v298_v33 }
 0x32f   :  { %v348_v36 = vpack.c.bf16 %v299_v34, %v299_v34  ;;  %309 = vst.msk [vmem:[#allocation2] sm:$0xf] %vm308_vm2, %v347_v35 }
 0x331   :  { %310 = vst.msk [vmem:[#allocation2 + $0x4] sm:$0xf] %vm308_vm2, %v348_v36 }
 0x332   :  { %424 = shalt.err (!%p421_p4)
}
 0x333   :  { %s425_s24 = scalar_lea.hbm %s543_s4, 128 }
 0x334   :  { %p426_p5 = scmp.ne.s32.totalorder %s543_s4, %s425_s24  ;;  %p429_p6 = scmp.lt.u32.totalorder %s425_s24, %s543_s4 }
 0x336   :  { %p431_p7 = pnand %p429_p6, %p426_p5 }
 0x338   :  { %434 = shalt.err (!%p431_p7)
}
 0x339   :  { %s440_s29 = smov 64   ;;  %s441_s30 = smov 4  }
 0x33a   :  { %322 = dma.vmem_to_hbm [thread:$0]  %s317_s21, 128, %s543_s4, [#allocation3], %s440_s29, %s440_s29, %s441_s30  }
 0x33b   :  { %435 = dma.done.wait [#allocation3], 128  }
 0x33c   :  { %436 = vsyncadd [#allocation3], 4294967168 }
 0x33d   :  { %326 = vsyncpa [#allocation3], 1 }

</bundles_post_ra>
